<compile_context>
chip_gen: v6e
topology: v6e:2x2x1
jax: 0.10.0
libtpu: 0.0.40
codegen_flags: <defaults>
</compile_context>

<pallas_src>
import functools

import jax
import jax.numpy as jnp
from jax import lax
from jax.experimental import pallas as pl
from jax.experimental.pallas import tpu as pltpu

_LARGE_NUM = 1.0e9          # matches the PyTorch module
_M_INIT = -1.0e30           # finite "-inf": exp(m_prev - m_new) underflows to 0


def _round_up(x, m):
    return (x + m - 1) // m * m


def _icl_loss_kernel(h1r_ref, h2r_ref, h1c_ref, h2c_ref,      # inputs
                     loss_ref,                                 # output
                     m_a, l_a, m_b, l_b,                       # scratch
                     *, tau, alpha, batch, tile, inversion, norm, mxu_dtype,
                     needs_col_mask):
    i = pl.program_id(0)            # row tile      ("parallel")
    j = pl.program_id(1)            # column tile   ("arbitrary" reduction axis)
    nj = pl.num_programs(1)
    inv_tau = 1.0 / tau

    # ---- load + row-normalize (rsqrt -> EUP slot instead of VPU divides) ----
    def _normalize(x):
        ss = jnp.sum(x * x, axis=1, keepdims=True)
        # F.normalize: x / max(||x||, 1e-12)  ==  x * rsqrt(max(ss, 1e-24))
        return x * lax.rsqrt(jnp.maximum(ss, 1e-24))

    h1r = h1r_ref[...].astype(jnp.float32)
    h2r = h2r_ref[...].astype(jnp.float32)
    h1c = h1c_ref[...].astype(jnp.float32)
    h2c = h2c_ref[...].astype(jnp.float32)
    if norm:
        h1r = _normalize(h1r)
        h2r = _normalize(h2r)
        h1c = _normalize(h1c)
        h2c = _normalize(h2c)

    # Fold 1/tau into the row-side (left) operands once: O(T*H) instead of O(T*T).
    h1rs = h1r * inv_tau
    h2rs = h2r * inv_tau

    # ---- similarity tiles: contract hidden on BOTH operands (no transposes) --
    dn = (((1,), (1,)), ((), ()))

    def _dot(a, b):
        return lax.dot_general(a.astype(mxu_dtype), b.astype(mxu_dtype), dn,
                               preferred_element_type=jnp.float32)

    s_ab = _dot(h1rs, h2c)          # logits_ab[row block, col block]
    s_ba = _dot(h2rs, h1c)          # logits_ba
    s_aa = _dot(h1rs, h1c)          # logits_aa
    s_bb = _dot(h2rs, h2c)          # logits_bb

    # ---- masking (fused selects, no B x B mask tensors materialized) --------
    row_g = i * tile + lax.broadcasted_iota(jnp.int32, (tile, tile), 0)
    col_g = j * tile + lax.broadcasted_iota(jnp.int32, (tile, tile), 1)
    diag = row_g == col_g
    s_aa = jnp.where(diag, s_aa - _LARGE_NUM, s_aa)
    s_bb = jnp.where(diag, s_bb - _LARGE_NUM, s_bb)
    if needs_col_mask:              # batch padded up to a tile multiple
        col_ok = col_g < batch
        neg = jnp.float32(-_LARGE_NUM)
        s_ab = jnp.where(col_ok, s_ab, neg)
        s_ba = jnp.where(col_ok, s_ba, neg)
        s_aa = jnp.where(col_ok, s_aa, neg)
        s_bb = jnp.where(col_ok, s_bb, neg)

    if inversion:
        a0, a1 = s_ab, s_bb
        b0, b1 = s_ba, s_aa
    else:
        a0, a1 = s_ab, s_aa
        b0, b1 = s_ba, s_bb

    # ---- online (flash-style) logsumexp over the concatenated 2B logits -----
    @pl.when(j == 0)
    def _init():
        m_a[...] = jnp.full((tile, 1), _M_INIT, jnp.float32)
        m_b[...] = jnp.full((tile, 1), _M_INIT, jnp.float32)
        l_a[...] = jnp.zeros((tile, 1), jnp.float32)
        l_b[...] = jnp.zeros((tile, 1), jnp.float32)

    def _update(m_ref, l_ref, c0, c1):
        m_prev = m_ref[...]
        # Elementwise combine on the VPU first -> one XLU reduce per stat
        # instead of two.
        m_new = jnp.maximum(
            m_prev, jnp.max(jnp.maximum(c0, c1), axis=1, keepdims=True))
        p = jnp.sum(jnp.exp(c0 - m_new) + jnp.exp(c1 - m_new),
                    axis=1, keepdims=True)
        l_ref[...] = jnp.exp(m_prev - m_new) * l_ref[...] + p
        m_ref[...] = m_new

    _update(m_a, l_a, a0, a1)
    _update(m_b, l_b, b0, b1)

    # ---- finalize: per-row loss = alpha-mixed logsumexp - target logit ------
    @pl.when(j == nj - 1)
    def _finalize():
        # Label always lands in the first half of the concat; target logit is
        # logits_ab[r, r] = logits_ba[r, r] = <h1_r, h2_r>/tau -> O(T*H) reduce
        # instead of extracting a diagonal from a B x B matrix.
        d = jnp.sum(h1rs * h2r, axis=1, keepdims=True)
        lse_a = m_a[...] + jnp.log(l_a[...])
        lse_b = m_b[...] + jnp.log(l_b[...])
        # alpha*(lse_a - d) + (1-alpha)*(lse_b - d) == alpha*lse_a + (1-alpha)*lse_b - d
        loss_ref[...] = alpha * lse_a + (1.0 - alpha) * lse_b - d


def icl_loss_pallas(emb, train_links, emb2=None, norm=True, *,
                    tau=0.05, ab_weight=0.5, n_view=2, intra_weight=1.0,
                    inversion=False, block_size=512, mxu_dtype=jnp.float32):
    """Pallas equivalent of icl_loss.forward.  Returns a scalar f32 loss.

    mxu_dtype: operand dtype fed to the MXU (accumulation is always f32).
      jnp.bfloat16 gives ~2-3x matmul throughput at a small accuracy cost.
    """
    # n_view / intra_weight kept for signature parity; forward only uses
    # n_view via num_classes = 2*B, realized here by the concatenated logits.
    emb = jnp.asarray(emb)                       # keep input dtype (no forced f32 copy)
    train_links = jnp.asarray(train_links, jnp.int32)

    # TODO(synk): move the row gather into the kernel via scalar-prefetched
    # train_links + per-row DMA for very large B*H; kept as plain-JAX glue here.
    zis = jnp.take(emb, train_links[:, 0], axis=0)
    src2 = emb if emb2 is None else jnp.asarray(emb2)
    zjs = jnp.take(src2, train_links[:, 1], axis=0)

    B, H = zis.shape
    itemsize = jnp.dtype(zis.dtype).itemsize

    # Tile size: multiple of 8 (sublane), capped by the 8-rounded batch.
    # Shrink until the estimated VMEM working set (four double-buffered (T, H)
    # input streams + ~10 live (T, T) f32 logit/temp slabs) stays under ~24 MiB
    # so the kernel keeps pipelining headroom even on v7x's 64 MiB VMEM.
    def _vmem_estimate(t):
        inputs = 4 * 2 * t * H * itemsize
        slabs = 10 * t * t * 4
        return inputs + slabs

    T = max(8, (min(int(block_size), _round_up(B, 8)) // 8) * 8)
    while T > 8 and _vmem_estimate(T) > 24 * 1024 * 1024:
        T //= 2
    T = max(8, (T // 8) * 8)
    Bp = _round_up(B, T)

    if Bp != B:
        pad = ((0, Bp - B), (0, 0))
        zis_p = jnp.pad(zis, pad)
        zjs_p = jnp.pad(zjs, pad)
    else:
        zis_p, zjs_p = zis, zjs

    grid = (Bp // T, Bp // T)
    kernel = functools.partial(
        _icl_loss_kernel,
        tau=float(tau), alpha=float(ab_weight), batch=int(B), tile=int(T),
        inversion=bool(inversion), norm=bool(norm),
        mxu_dtype=mxu_dtype, needs_col_mask=(Bp != B))

    row_spec = pl.BlockSpec((T, H), lambda i, j: (i, 0))
    col_spec = pl.BlockSpec((T, H), lambda i, j: (j, 0))
    out_spec = pl.BlockSpec((T, 1), lambda i, j: (i, 0))

    per_row = pl.pallas_call(
        kernel,
        out_shape=jax.ShapeDtypeStruct((Bp, 1), jnp.float32),
        grid_spec=pltpu.PrefetchScalarGridSpec(
            num_scalar_prefetch=0,
            grid=grid,
            in_specs=[row_spec, row_spec, col_spec, col_spec],
            out_specs=out_spec,
            scratch_shapes=[pltpu.VMEM((T, 1), jnp.float32),
                            pltpu.VMEM((T, 1), jnp.float32),
                            pltpu.VMEM((T, 1), jnp.float32),
                            pltpu.VMEM((T, 1), jnp.float32)]),
        compiler_params=pltpu.CompilerParams(
            dimension_semantics=("parallel", "arbitrary"),
            vmem_limit_bytes=32 * 1024 * 1024),
    )(zis_p, zjs_p, zis_p, zjs_p)

    # Tiny glue reduction (keeps the row-tile axis "parallel" across TCs).
    return jnp.sum(per_row[:B, 0]) / B


def _icl_loss_ref(emb, train_links, emb2=None, norm=True, *,
                  tau=0.05, ab_weight=0.5, inversion=False):
    """Pure-JAX reference mirroring the PyTorch module exactly."""
    emb = jnp.asarray(emb, jnp.float32)
    if norm:
        emb = emb / jnp.maximum(jnp.linalg.norm(emb, axis=1, keepdims=True), 1e-12)
        if emb2 is not None:
            emb2 = jnp.asarray(emb2, jnp.float32)
            emb2 = emb2 / jnp.maximum(jnp.linalg.norm(emb2, axis=1, keepdims=True), 1e-12)
    h1 = emb[train_links[:, 0]]
    h2 = (emb2 if emb2 is not None else emb)[train_links[:, 1]]
    B = h1.shape[0]
    masks = jnp.eye(B, dtype=jnp.float32)
    labels = jnp.eye(B, 2 * B, dtype=jnp.float32)
    laa = h1 @ h1.T / tau - masks * _LARGE_NUM
    lbb = h2 @ h2.T / tau - masks * _LARGE_NUM
    lab = h1 @ h2.T / tau
    lba = h2 @ h1.T / tau
    if inversion:
        la = jnp.concatenate([lab, lbb], axis=1)
        lb = jnp.concatenate([lba, laa], axis=1)
    else:
        la = jnp.concatenate([lab, laa], axis=1)
        lb = jnp.concatenate([lba, lbb], axis=1)

    def softxent(target, logits):
        logprobs = jax.nn.log_softmax(logits, axis=1)
        return -(target * logprobs).sum() / logits.shape[0]

    return ab_weight * softxent(labels, la) + (1 - ab_weight) * softxent(labels, lb)


if __name__ == "__main__":
    key = jax.random.PRNGKey(0)
    k1, k2, k3, k4, k5 = jax.random.split(key, 5)

    # Test 1: small shapes, single tile, f32 MXU path.
    num_ent, hidden, batch = 16, 32, 8
    emb = jax.random.normal(k1, (num_ent, hidden), dtype=jnp.float32)
    links = jnp.stack([jax.random.randint(k2, (batch,), 0, num_ent),
                       jax.random.randint(k3, (batch,), 0, num_ent)],
                      axis=1).astype(jnp.int32)
    out = jax.block_until_ready(icl_loss_pallas(emb, links, emb2=None, norm=True))
    ref = _icl_loss_ref(emb, links, emb2=None, norm=True)
    assert abs(float(out) - float(ref)) <= 1e-3 * max(1.0, abs(float(ref))), (float(out), float(ref))

    # Test 2: ragged batch (padding + column masking), 3x3 tile grid, emb2 + inversion.
    num_ent2, hidden2, batch2 = 24, 48, 21
    emb_a = jax.random.normal(k4, (num_ent2, hidden2), dtype=jnp.float32)
    emb_b = jax.random.normal(k5, (num_ent2, hidden2), dtype=jnp.float32)
    links2 = jnp.stack([jax.random.randint(k2, (batch2,), 0, num_ent2),
                        jax.random.randint(k3, (batch2,), 0, num_ent2)],
                       axis=1).astype(jnp.int32)
    out2 = jax.block_until_ready(
        icl_loss_pallas(emb_a, links2, emb2=emb_b, norm=True, ab_weight=0.3,
                        inversion=True, block_size=8))
    ref2 = _icl_loss_ref(emb_a, links2, emb2=emb_b, norm=True, ab_weight=0.3,
                         inversion=True)
    assert abs(float(out2) - float(ref2)) <= 1e-3 * max(1.0, abs(float(ref2))), (float(out2), float(ref2))

    # Test 3: bf16 MXU operands (f32 accumulation) — fast-MXU path, looser tolerance.
    out3 = jax.block_until_ready(icl_loss_pallas(emb, links, mxu_dtype=jnp.bfloat16))
    assert abs(float(out3) - float(ref)) <= 1e-1 * max(1.0, abs(float(ref))), (float(out3), float(ref))

    print("KERNEL_OK")
</pallas_src>

<mosaic_0001>
module attributes {stable_mosaic.version = 11 : i64} {
  func.func @_icl_loss_kernel(%arg0: i32, %arg1: i32, %arg2: memref<8x32xf32, #tpu.memory_space<vmem>>, %arg3: memref<8x32xf32, #tpu.memory_space<vmem>>, %arg4: memref<8x32xf32, #tpu.memory_space<vmem>>, %arg5: memref<8x32xf32, #tpu.memory_space<vmem>>, %arg6: memref<8x1xf32, #tpu.memory_space<vmem>>, %arg7: memref<8x1xf32, #tpu.memory_space<vmem>>, %arg8: memref<8x1xf32, #tpu.memory_space<vmem>>, %arg9: memref<8x1xf32, #tpu.memory_space<vmem>>, %arg10: memref<8x1xf32, #tpu.memory_space<vmem>>) attributes {dimension_semantics = [#tpu.dimension_semantics<parallel>, #tpu.dimension_semantics<arbitrary>], iteration_bounds = array<i64: 1, 1>, scalar_prefetch = 0 : i64, scratch_operands = 4 : i64, tpu.core_type = #tpu.core_type<tc>, window_params = [{transform_indices = @transform_0, window_bounds = array<i64: 8, 32>}, {transform_indices = @transform_1, window_bounds = array<i64: 8, 32>}, {transform_indices = @transform_2, window_bounds = array<i64: 8, 32>}, {transform_indices = @transform_3, window_bounds = array<i64: 8, 32>}, {transform_indices = @transform_4, window_bounds = array<i64: 8, 1>}]} {
    %c0 = arith.constant 0 : index
    %c0_0 = arith.constant 0 : index
    %0 = vector.load %arg2[%c0, %c0_0] : memref<8x32xf32, #tpu.memory_space<vmem>>, vector<8x32xf32>
    %c0_1 = arith.constant 0 : index
    %c0_2 = arith.constant 0 : index
    %1 = vector.load %arg3[%c0_1, %c0_2] : memref<8x32xf32, #tpu.memory_space<vmem>>, vector<8x32xf32>
    %c0_3 = arith.constant 0 : index
    %c0_4 = arith.constant 0 : index
    %2 = vector.load %arg4[%c0_3, %c0_4] : memref<8x32xf32, #tpu.memory_space<vmem>>, vector<8x32xf32>
    %c0_5 = arith.constant 0 : index
    %c0_6 = arith.constant 0 : index
    %3 = vector.load %arg5[%c0_5, %c0_6] : memref<8x32xf32, #tpu.memory_space<vmem>>, vector<8x32xf32>
    %4 = arith.mulf %0, %0 : vector<8x32xf32>
    %cst = arith.constant dense<0.000000e+00> : vector<8xf32>
    %5 = vector.multi_reduction <add>, %4, %cst [1] : vector<8x32xf32> to vector<8xf32>
    %6 = vector.shape_cast %5 : vector<8xf32> to vector<8x1xf32>
    %cst_7 = arith.constant 1.000000e-24 : f32
    %7 = vector.broadcast %cst_7 : f32 to vector<8x1xf32>
    %8 = arith.maximumf %6, %7 : vector<8x1xf32>
    %9 = math.rsqrt %8 : vector<8x1xf32>
    %10 = vector.broadcast %9 : vector<8x1xf32> to vector<8x32xf32>
    %11 = arith.mulf %0, %10 : vector<8x32xf32>
    %12 = arith.mulf %1, %1 : vector<8x32xf32>
    %cst_8 = arith.constant dense<0.000000e+00> : vector<8xf32>
    %13 = vector.multi_reduction <add>, %12, %cst_8 [1] : vector<8x32xf32> to vector<8xf32>
    %14 = vector.shape_cast %13 : vector<8xf32> to vector<8x1xf32>
    %cst_9 = arith.constant 1.000000e-24 : f32
    %15 = vector.broadcast %cst_9 : f32 to vector<8x1xf32>
    %16 = arith.maximumf %14, %15 : vector<8x1xf32>
    %17 = math.rsqrt %16 : vector<8x1xf32>
    %18 = vector.broadcast %17 : vector<8x1xf32> to vector<8x32xf32>
    %19 = arith.mulf %1, %18 : vector<8x32xf32>
    %20 = arith.mulf %2, %2 : vector<8x32xf32>
    %cst_10 = arith.constant dense<0.000000e+00> : vector<8xf32>
    %21 = vector.multi_reduction <add>, %20, %cst_10 [1] : vector<8x32xf32> to vector<8xf32>
    %22 = vector.shape_cast %21 : vector<8xf32> to vector<8x1xf32>
    %cst_11 = arith.constant 1.000000e-24 : f32
    %23 = vector.broadcast %cst_11 : f32 to vector<8x1xf32>
    %24 = arith.maximumf %22, %23 : vector<8x1xf32>
    %25 = math.rsqrt %24 : vector<8x1xf32>
    %26 = vector.broadcast %25 : vector<8x1xf32> to vector<8x32xf32>
    %27 = arith.mulf %2, %26 : vector<8x32xf32>
    %28 = arith.mulf %3, %3 : vector<8x32xf32>
    %cst_12 = arith.constant dense<0.000000e+00> : vector<8xf32>
    %29 = vector.multi_reduction <add>, %28, %cst_12 [1] : vector<8x32xf32> to vector<8xf32>
    %30 = vector.shape_cast %29 : vector<8xf32> to vector<8x1xf32>
    %cst_13 = arith.constant 1.000000e-24 : f32
    %31 = vector.broadcast %cst_13 : f32 to vector<8x1xf32>
    %32 = arith.maximumf %30, %31 : vector<8x1xf32>
    %33 = math.rsqrt %32 : vector<8x1xf32>
    %34 = vector.broadcast %33 : vector<8x1xf32> to vector<8x32xf32>
    %35 = arith.mulf %3, %34 : vector<8x32xf32>
    %cst_14 = arith.constant 2.000000e+01 : f32
    %36 = vector.broadcast %cst_14 : f32 to vector<8x32xf32>
    %37 = arith.mulf %11, %36 : vector<8x32xf32>
    %cst_15 = arith.constant 2.000000e+01 : f32
    %38 = vector.broadcast %cst_15 : f32 to vector<8x32xf32>
    %39 = arith.mulf %19, %38 : vector<8x32xf32>
    %cst_16 = arith.constant dense<0.000000e+00> : vector<8x8xf32>
    %40 = tpu.matmul %37, %35, %cst_16 {dimension_numbers = #tpu.dot_dimension_numbers<[1], [1], [0], [0], [0, 0, 1, 0], [], []>} : vector<8x32xf32>, vector<8x32xf32>, vector<8x8xf32> -> vector<8x8xf32>
    %cst_17 = arith.constant dense<0.000000e+00> : vector<8x8xf32>
    %41 = tpu.matmul %39, %27, %cst_17 {dimension_numbers = #tpu.dot_dimension_numbers<[1], [1], [0], [0], [0, 0, 1, 0], [], []>} : vector<8x32xf32>, vector<8x32xf32>, vector<8x8xf32> -> vector<8x8xf32>
    %cst_18 = arith.constant dense<0.000000e+00> : vector<8x8xf32>
    %42 = tpu.matmul %37, %27, %cst_18 {dimension_numbers = #tpu.dot_dimension_numbers<[1], [1], [0], [0], [0, 0, 1, 0], [], []>} : vector<8x32xf32>, vector<8x32xf32>, vector<8x8xf32> -> vector<8x8xf32>
    %cst_19 = arith.constant dense<0.000000e+00> : vector<8x8xf32>
    %43 = tpu.matmul %39, %35, %cst_19 {dimension_numbers = #tpu.dot_dimension_numbers<[1], [1], [0], [0], [0, 0, 1, 0], [], []>} : vector<8x32xf32>, vector<8x32xf32>, vector<8x8xf32> -> vector<8x8xf32>
    %c8_i32 = arith.constant 8 : i32
    %44 = arith.muli %arg0, %c8_i32 : i32
    %45 = tpu.iota {dimensions = array<i32: 0>} : vector<8x8xi32>
    %46 = vector.broadcast %44 : i32 to vector<8x8xi32>
    %47 = arith.addi %46, %45 : vector<8x8xi32>
    %c8_i32_20 = arith.constant 8 : i32
    %48 = arith.muli %arg1, %c8_i32_20 : i32
    %49 = tpu.iota {dimensions = array<i32: 1>} : vector<8x8xi32>
    %50 = vector.broadcast %48 : i32 to vector<8x8xi32>
    %51 = arith.addi %50, %49 : vector<8x8xi32>
    %52 = arith.cmpi eq, %47, %51 : vector<8x8xi32>
    %cst_21 = arith.constant 1.000000e+09 : f32
    %53 = vector.broadcast %cst_21 : f32 to vector<8x8xf32>
    %54 = arith.subf %42, %53 : vector<8x8xf32>
    %55 = arith.select %52, %54, %42 : vector<8x8xi1>, vector<8x8xf32>
    %cst_22 = arith.constant 1.000000e+09 : f32
    %56 = vector.broadcast %cst_22 : f32 to vector<8x8xf32>
    %57 = arith.subf %43, %56 : vector<8x8xf32>
    %58 = arith.select %52, %57, %43 : vector<8x8xi1>, vector<8x8xf32>
    %c0_i32 = arith.constant 0 : i32
    %59 = arith.cmpi eq, %arg1, %c0_i32 : i32
    %60 = arith.extui %59 : i1 to i32
    %c0_i32_23 = arith.constant 0 : i32
    %61 = arith.cmpi ne, %60, %c0_i32_23 : i32
    scf.if %61 {
      %cst_46 = arith.constant -1.000000e+30 : f32
      %107 = vector.broadcast %cst_46 : f32 to vector<8x1xf32>
      %c0_47 = arith.constant 0 : index
      %c0_48 = arith.constant 0 : index
      %108 = vector.load %arg7[%c0_47, %c0_48] : memref<8x1xf32, #tpu.memory_space<vmem>>, vector<8x1xf32>
      tpu.vector_store %arg7[%c0_47, %c0_48], %107 {strides = array<i32>} : memref<8x1xf32, #tpu.memory_space<vmem>>, vector<8x1xf32>,
      %cst_49 = arith.constant -1.000000e+30 : f32
      %109 = vector.broadcast %cst_49 : f32 to vector<8x1xf32>
      %c0_50 = arith.constant 0 : index
      %c0_51 = arith.constant 0 : index
      %110 = vector.load %arg9[%c0_50, %c0_51] : memref<8x1xf32, #tpu.memory_space<vmem>>, vector<8x1xf32>
      tpu.vector_store %arg9[%c0_50, %c0_51], %109 {strides = array<i32>} : memref<8x1xf32, #tpu.memory_space<vmem>>, vector<8x1xf32>,
      %cst_52 = arith.constant 0.000000e+00 : f32
      %111 = vector.broadcast %cst_52 : f32 to vector<8x1xf32>
      %c0_53 = arith.constant 0 : index
      %c0_54 = arith.constant 0 : index
      %112 = vector.load %arg8[%c0_53, %c0_54] : memref<8x1xf32, #tpu.memory_space<vmem>>, vector<8x1xf32>
      tpu.vector_store %arg8[%c0_53, %c0_54], %111 {strides = array<i32>} : memref<8x1xf32, #tpu.memory_space<vmem>>, vector<8x1xf32>,
      %cst_55 = arith.constant 0.000000e+00 : f32
      %113 = vector.broadcast %cst_55 : f32 to vector<8x1xf32>
      %c0_56 = arith.constant 0 : index
      %c0_57 = arith.constant 0 : index
      %114 = vector.load %arg10[%c0_56, %c0_57] : memref<8x1xf32, #tpu.memory_space<vmem>>, vector<8x1xf32>
      tpu.vector_store %arg10[%c0_56, %c0_57], %113 {strides = array<i32>} : memref<8x1xf32, #tpu.memory_space<vmem>>, vector<8x1xf32>,
    } else {
    }
    %c0_24 = arith.constant 0 : index
    %c0_25 = arith.constant 0 : index
    %62 = vector.load %arg7[%c0_24, %c0_25] : memref<8x1xf32, #tpu.memory_space<vmem>>, vector<8x1xf32>
    %63 = arith.maximumf %40, %55 : vector<8x8xf32>
    %cst_26 = arith.constant dense<0xFF800000> : vector<8xf32>
    %64 = vector.multi_reduction <maximumf>, %63, %cst_26 [1] : vector<8x8xf32> to vector<8xf32>
    %65 = vector.shape_cast %64 : vector<8xf32> to vector<8x1xf32>
    %66 = arith.maximumf %62, %65 : vector<8x1xf32>
    %67 = vector.broadcast %66 : vector<8x1xf32> to vector<8x8xf32>
    %68 = arith.subf %40, %67 : vector<8x8xf32>
    %69 = math.exp %68 : vector<8x8xf32>
    %70 = vector.broadcast %66 : vector<8x1xf32> to vector<8x8xf32>
    %71 = arith.subf %55, %70 : vector<8x8xf32>
    %72 = math.exp %71 : vector<8x8xf32>
    %73 = arith.addf %69, %72 : vector<8x8xf32>
    %cst_27 = arith.constant dense<0.000000e+00> : vector<8xf32>
    %74 = vector.multi_reduction <add>, %73, %cst_27 [1] : vector<8x8xf32> to vector<8xf32>
    %75 = vector.shape_cast %74 : vector<8xf32> to vector<8x1xf32>
    %76 = arith.subf %62, %66 : vector<8x1xf32>
    %77 = math.exp %76 : vector<8x1xf32>
    %c0_28 = arith.constant 0 : index
    %c0_29 = arith.constant 0 : index
    %78 = vector.load %arg8[%c0_28, %c0_29] : memref<8x1xf32, #tpu.memory_space<vmem>>, vector<8x1xf32>
    %79 = arith.mulf %77, %78 : vector<8x1xf32>
    %80 = arith.addf %79, %75 : vector<8x1xf32>
    %c0_30 = arith.constant 0 : index
    %c0_31 = arith.constant 0 : index
    %81 = vector.load %arg8[%c0_30, %c0_31] : memref<8x1xf32, #tpu.memory_space<vmem>>, vector<8x1xf32>
    tpu.vector_store %arg8[%c0_30, %c0_31], %80 {strides = array<i32>} : memref<8x1xf32, #tpu.memory_space<vmem>>, vector<8x1xf32>,
    %c0_32 = arith.constant 0 : index
    %c0_33 = arith.constant 0 : index
    %82 = vector.load %arg7[%c0_32, %c0_33] : memref<8x1xf32, #tpu.memory_space<vmem>>, vector<8x1xf32>
    tpu.vector_store %arg7[%c0_32, %c0_33], %66 {strides = array<i32>} : memref<8x1xf32, #tpu.memory_space<vmem>>, vector<8x1xf32>,
    %c0_34 = arith.constant 0 : index
    %c0_35 = arith.constant 0 : index
    %83 = vector.load %arg9[%c0_34, %c0_35] : memref<8x1xf32, #tpu.memory_space<vmem>>, vector<8x1xf32>
    %84 = arith.maximumf %41, %58 : vector<8x8xf32>
    %cst_36 = arith.constant dense<0xFF800000> : vector<8xf32>
    %85 = vector.multi_reduction <maximumf>, %84, %cst_36 [1] : vector<8x8xf32> to vector<8xf32>
    %86 = vector.shape_cast %85 : vector<8xf32> to vector<8x1xf32>
    %87 = arith.maximumf %83, %86 : vector<8x1xf32>
    %88 = vector.broadcast %87 : vector<8x1xf32> to vector<8x8xf32>
    %89 = arith.subf %41, %88 : vector<8x8xf32>
    %90 = math.exp %89 : vector<8x8xf32>
    %91 = vector.broadcast %87 : vector<8x1xf32> to vector<8x8xf32>
    %92 = arith.subf %58, %91 : vector<8x8xf32>
    %93 = math.exp %92 : vector<8x8xf32>
    %94 = arith.addf %90, %93 : vector<8x8xf32>
    %cst_37 = arith.constant dense<0.000000e+00> : vector<8xf32>
    %95 = vector.multi_reduction <add>, %94, %cst_37 [1] : vector<8x8xf32> to vector<8xf32>
    %96 = vector.shape_cast %95 : vector<8xf32> to vector<8x1xf32>
    %97 = arith.subf %83, %87 : vector<8x1xf32>
    %98 = math.exp %97 : vector<8x1xf32>
    %c0_38 = arith.constant 0 : index
    %c0_39 = arith.constant 0 : index
    %99 = vector.load %arg10[%c0_38, %c0_39] : memref<8x1xf32, #tpu.memory_space<vmem>>, vector<8x1xf32>
    %100 = arith.mulf %98, %99 : vector<8x1xf32>
    %101 = arith.addf %100, %96 : vector<8x1xf32>
    %c0_40 = arith.constant 0 : index
    %c0_41 = arith.constant 0 : index
    %102 = vector.load %arg10[%c0_40, %c0_41] : memref<8x1xf32, #tpu.memory_space<vmem>>, vector<8x1xf32>
    tpu.vector_store %arg10[%c0_40, %c0_41], %101 {strides = array<i32>} : memref<8x1xf32, #tpu.memory_space<vmem>>, vector<8x1xf32>,
    %c0_42 = arith.constant 0 : index
    %c0_43 = arith.constant 0 : index
    %103 = vector.load %arg9[%c0_42, %c0_43] : memref<8x1xf32, #tpu.memory_space<vmem>>, vector<8x1xf32>
    tpu.vector_store %arg9[%c0_42, %c0_43], %87 {strides = array<i32>} : memref<8x1xf32, #tpu.memory_space<vmem>>, vector<8x1xf32>,
    %c0_i32_44 = arith.constant 0 : i32
    %104 = arith.cmpi eq, %arg1, %c0_i32_44 : i32
    %105 = arith.extui %104 : i1 to i32
    %c0_i32_45 = arith.constant 0 : i32
    %106 = arith.cmpi ne, %105, %c0_i32_45 : i32
    scf.if %106 {
      %107 = arith.mulf %37, %19 : vector<8x32xf32>
      %cst_46 = arith.constant dense<0.000000e+00> : vector<8xf32>
      %108 = vector.multi_reduction <add>, %107, %cst_46 [1] : vector<8x32xf32> to vector<8xf32>
      %109 = vector.shape_cast %108 : vector<8xf32> to vector<8x1xf32>
      %c0_47 = arith.constant 0 : index
      %c0_48 = arith.constant 0 : index
      %110 = vector.load %arg7[%c0_47, %c0_48] : memref<8x1xf32, #tpu.memory_space<vmem>>, vector<8x1xf32>
      %c0_49 = arith.constant 0 : index
      %c0_50 = arith.constant 0 : index
      %111 = vector.load %arg8[%c0_49, %c0_50] : memref<8x1xf32, #tpu.memory_space<vmem>>, vector<8x1xf32>
      %112 = math.log %111 : vector<8x1xf32>
      %113 = arith.addf %110, %112 : vector<8x1xf32>
      %c0_51 = arith.constant 0 : index
      %c0_52 = arith.constant 0 : index
      %114 = vector.load %arg9[%c0_51, %c0_52] : memref<8x1xf32, #tpu.memory_space<vmem>>, vector<8x1xf32>
      %c0_53 = arith.constant 0 : index
      %c0_54 = arith.constant 0 : index
      %115 = vector.load %arg10[%c0_53, %c0_54] : memref<8x1xf32, #tpu.memory_space<vmem>>, vector<8x1xf32>
      %116 = math.log %115 : vector<8x1xf32>
      %117 = arith.addf %114, %116 : vector<8x1xf32>
      %cst_55 = arith.constant 5.000000e-01 : f32
      %118 = vector.broadcast %cst_55 : f32 to vector<8x1xf32>
      %119 = arith.mulf %118, %113 : vector<8x1xf32>
      %cst_56 = arith.constant 5.000000e-01 : f32
      %120 = vector.broadcast %cst_56 : f32 to vector<8x1xf32>
      %121 = arith.mulf %120, %117 : vector<8x1xf32>
      %122 = arith.addf %119, %121 : vector<8x1xf32>
      %123 = arith.subf %122, %109 : vector<8x1xf32>
      %c0_57 = arith.constant 0 : index
      %c0_58 = arith.constant 0 : index
      %124 = vector.load %arg6[%c0_57, %c0_58] : memref<8x1xf32, #tpu.memory_space<vmem>>, vector<8x1xf32>
      tpu.vector_store %arg6[%c0_57, %c0_58], %123 {strides = array<i32>} : memref<8x1xf32, #tpu.memory_space<vmem>>, vector<8x1xf32>,
    } else {
    }
    return
  }
  func.func @transform_0(%arg0: i32, %arg1: i32) -> (i32, i32) {
    %c0_i32 = arith.constant 0 : i32
    %c0_i32_0 = arith.constant 0 : i32
    return %arg0, %c0_i32 : i32, i32
  }
  func.func @transform_1(%arg0: i32, %arg1: i32) -> (i32, i32) {
    %c0_i32 = arith.constant 0 : i32
    %c0_i32_0 = arith.constant 0 : i32
    return %arg0, %c0_i32 : i32, i32
  }
  func.func @transform_2(%arg0: i32, %arg1: i32) -> (i32, i32) {
    %c0_i32 = arith.constant 0 : i32
    %c0_i32_0 = arith.constant 0 : i32
    return %arg1, %c0_i32 : i32, i32
  }
  func.func @transform_3(%arg0: i32, %arg1: i32) -> (i32, i32) {
    %c0_i32 = arith.constant 0 : i32
    %c0_i32_0 = arith.constant 0 : i32
    return %arg1, %c0_i32 : i32, i32
  }
  func.func @transform_4(%arg0: i32, %arg1: i32) -> (i32, i32) {
    %c0_i32 = arith.constant 0 : i32
    %c0_i32_0 = arith.constant 0 : i32
    return %arg0, %c0_i32 : i32, i32
  }
}

</mosaic_0001>

<bundles_post_ra>
// kernel: tpu_custom_call.1
= control target key start
LH: loop header
LB: loop body
LE: loop exit
PB: predicated region body
PF: predicated region fallthrough
CT: control target
= control target key end

     0   :  { %9 = vsyncpa [#allocation7], 0  ;;  %s743_s0 = inlined_call_operand.hbm [shape: f32[8,32], index: 0, kind: input, shape index: {}]   ;;  %s744_s1 = inlined_call_operand.hbm [shape: f32[8,32], index: 1, kind: input, shape index: {}]   ;;  %s745_s2 = inlined_call_operand.hbm [shape: f32[8,32], index: 2, kind: input, shape index: {}]   ;;  %s746_s3 = inlined_call_operand.hbm [shape: f32[8,32], index: 3, kind: input, shape index: {}]   ;;  %s747_s4 = inlined_call_operand.vmem [shape: f32[8,1], index: 4, kind: output, shape index: {}]  }
   0x1   :  { %10 = vsyncpa [#allocation9], 0 }
   0x2   :  { %11 = vsyncpa [#allocation12], 0  ;;  %s662_s15 = smov [#allocation8]   ;;  %s663_s17 = smov [#allocation6]  }
   0x3   :  { %s28_s16 = sshll.u32 %s662_s15, 4  ;;  %s18_s18 = sshll.u32 %s663_s17, 4  ;;  %s29_s16 = int_to_ptr.vmem [resolvable:$true] %s28_s16  ;;  %s19_s18 = int_to_ptr.vmem [resolvable:$true] %s18_s18 }
   0x4   :  { %s584_s19 = scalar_lea.vmem %s29_s16, 128  ;;  %p589_p1 = scmp.lt.s32.totalorder %s29_s16, %s29_s16 }
   0x5   :  { %p585_p0 = scmp.ne.s32.totalorder %s29_s16, %s584_s19  ;;  %p590_p2 = scmp.lt.s32.totalorder %s584_s19, %s584_s19 }
   0x7   :  { %p591_p3 = por %p590_p2, %p589_p1 }
   0x9   :  { %p592_p4 = pnand %p591_p3, %p585_p0 }
   0xb   :  { %595 = shalt.err (!%p592_p4)
}
   0xc   :  { %31 = dma.hbm_to_vmem [thread:$0]  %s744_s1, 128, %s29_s16, [#allocation9]  }
   0xd   :  { %s604_s22 = scalar_lea.vmem %s19_s18, 128  ;;  %p609_p6 = scmp.lt.s32.totalorder %s19_s18, %s19_s18 }
   0xe   :  { %p605_p5 = scmp.ne.s32.totalorder %s19_s18, %s604_s22  ;;  %p610_p7 = scmp.lt.s32.totalorder %s604_s22, %s604_s22 }
  0x10   :  { %p611_p8 = por %p610_p7, %p609_p6 }
  0x12   :  { %p612_p9 = pnand %p611_p8, %p605_p5 }
  0x14   :  { %615 = shalt.err (!%p612_p9)
}
  0x15   :  { %21 = dma.hbm_to_vmem [thread:$0]  %s743_s0, 128, %s19_s18, [#allocation7]  }
  0x16   :  { %s664_s25 = smov [#allocation10]   ;;  %s665_s27 = smov [#allocation11]  }
  0x17   :  { %s38_s26 = sshll.u32 %s664_s25, 4  ;;  %s48_s28 = sshll.u32 %s665_s27, 4  ;;  %s39_s26 = int_to_ptr.vmem [resolvable:$true] %s38_s26  ;;  %s49_s28 = int_to_ptr.vmem [resolvable:$true] %s48_s28 }
  0x18   :  { %s624_s29 = scalar_lea.vmem %s39_s26, 128  ;;  %p629_p11 = scmp.lt.s32.totalorder %s39_s26, %s39_s26 }
  0x19   :  { %p625_p10 = scmp.ne.s32.totalorder %s39_s26, %s624_s29  ;;  %p630_p12 = scmp.lt.s32.totalorder %s624_s29, %s624_s29 }
  0x1b   :  { %p631_p13 = por %p630_p12, %p629_p11 }
  0x1d   :  { %p632_p0 = pnand %p631_p13, %p625_p10 }
  0x1f   :  { %635 = shalt.err (!%p632_p0)
}
  0x20   :  { %41 = dma.hbm_to_vmem [thread:$0]  %s745_s2, 128, %s39_s26, [#allocation9]  }
  0x21   :  { %s644_s5 = scalar_lea.vmem %s49_s28, 128  ;;  %p649_p2 = scmp.lt.s32.totalorder %s49_s28, %s49_s28 }
  0x22   :  { %p645_p1 = scmp.ne.s32.totalorder %s49_s28, %s644_s5  ;;  %p650_p3 = scmp.lt.s32.totalorder %s644_s5, %s644_s5 }
  0x24   :  { %p651_p4 = por %p650_p3, %p649_p2 }
  0x26   :  { %p652_p5 = pnand %p651_p4, %p645_p1 }
  0x28   :  { %655 = shalt.err (!%p652_p5)
}
  0x29   :  { %51 = dma.hbm_to_vmem [thread:$0]  %s746_s3, 128, %s49_s28, [#allocation12]  }
  0x2a   :  { %656 = dma.done.wait [#allocation7], 128  }
  0x2b   :  { %657 = vsyncadd [#allocation7], 4294967168 }
  0x2c   :  { %658 = dma.done.wait [#allocation9], 256  }
  0x2d   :  { %659 = vsyncadd [#allocation9], 4294967040 }
  0x2e   :  { %660 = dma.done.wait [#allocation12], 128  }
  0x2f   :  { %661 = vsyncadd [#allocation12], 4294967168  ;;  %v66_v0 = vld [vmem:[#allocation10] sm:$0xff]  ;;  %vm69_vm0 = vcmask 261120   ;;  %v64_v1 = vld [vmem:[#allocation6] sm:$0xff]  ;;  %v666_v12 = vmov 0.0   ;;  %v392_v33 = vlaneseq }
  0x30   :  { %v67_v2 = vld [vmem:[#allocation11] sm:$0xff]  ;;  %v83_v3 = vmul.f32 %v66_v0, %v66_v0  ;;  %v68_v4 = vmul.f32 %v64_v1, %v64_v1  ;;  %v65_v6 = vld [vmem:[#allocation8] sm:$0xff]  ;;  %527 = vmatprep.subr.mxu1 %v666_v12  ;;  %522 = vmatprep.subr.mxu0 %v666_v12  ;;  %vm667_vm1 = vmmov 0   ;;  %vm410_vm2 = vcmask 7168  }
  0x31   :  { %v90_v5 = vmul.f32 %v67_v2, %v67_v2  ;;  %v76_v7 = vmul.f32 %v65_v6, %v65_v6  ;;  %529 = vmatprep.mubr.msk.f32.mxu1 %vm667_vm1, %v666_v12  ;;  %524 = vmatprep.mubr.msk.f32.mxu0 %vm667_vm1, %v666_v12  ;;  %v668_v32 = vmov -1e+30   ;;  %413 = vst.msk [vmem:[#allocation3] sm:$0xff] %vm410_vm2, %v666_v12  ;;  %414 = vst.msk [vmem:[#allocation5] sm:$0xff] %vm410_vm2, %v666_v12  ;;  %v393_v36 = vshrl.u32 %v392_v33, 7 }
  0x32   :  { %v84_v8 = vsel %vm69_vm0, %v83_v3, 0.0  ;;  %v70_v9 = vsel %vm69_vm0, %v68_v4, 0.0  ;;  %412 = vst.msk [vmem:[#allocation4] sm:$0xff] %vm410_vm2, %v668_v32  ;;  %411 = vst.msk [vmem:[#allocation2] sm:$0xff] %vm410_vm2, %v668_v32  ;;  %v398_v37 = vand.u32 127, %v392_v33  ;;  %vm417_vm4 = vcmask 64512  }
  0x33   :  { %85 = vadd.xlane.f32.xlu0 %v84_v8  ;;  %71 = vadd.xlane.f32.xlu1 %v70_v9  ;;  %v91_v10 = vsel %vm69_vm0, %v90_v5, 0.0  ;;  %v77_v11 = vsel %vm69_vm0, %v76_v7, 0.0  ;;  %v669_v52 = vmov 0  }
  0x34   :  { %vm401_vm3 = vcmp.eq.s32.totalorder %v393_v36, %v398_v37  ;;  %551 = vset.pattern.permute.xlu1 %v669_v52  ;;  %550 = vset.pattern.permute.xlu0 %v669_v52 }
  0x37   :  { %92 = vadd.xlane.f32.xlu0 %v91_v10  ;;  %78 = vadd.xlane.f32.xlu1 %v77_v11 }
  0x39   :  { %v446_v53 = vld [vmem:[#allocation4] sm:$0xff]  ;;  %v415_v54 = vld [vmem:[#allocation2] sm:$0xff] }
  0xbc   :  { %v86_v13 = vpop.xlane.xlu0 %85  ;;  %v72_v14 = vpop.xlane.xlu1 %71 }
  0xbd   :  { %v87_v15 = vmax.f32 %v86_v13, 1e-24  ;;  %v73_v16 = vmax.f32 %v72_v14, 1e-24 }
  0xbf   :  { %552 = vrsqrt.f32 %v87_v15 }
  0xc0   :  { %554 = vrsqrt.f32 %v73_v16  ;;  %v93_v17 = vpop.xlane.xlu0 %92  ;;  %v79_v18 = vpop.xlane.xlu1 %78 }
  0xc1   :  { %v94_v19 = vmax.f32 %v93_v17, 1e-24  ;;  %v80_v20 = vmax.f32 %v79_v18, 1e-24 }
  0xc3   :  { %556 = vrsqrt.f32 %v94_v19  ;;  %v470_v19 = vld [vmem:[#allocation5] sm:$0xff] }
  0xc4   :  { %558 = vrsqrt.f32 %v80_v20 }
  0xcc   :  { %v553_v21 = vpop.eup %552 }
  0xcd   :  { %v555_v22 = vpop.eup %554  ;;  %v89_v23 = vmul.f32 %v553_v21, %v66_v0  ;;  %v440_v21 = vld [vmem:[#allocation3] sm:$0xff] }
  0xce   :  { %v75_v24 = vmul.f32 %v555_v22, %v64_v1 }
  0xcf   :  { %528 = vmatpush3.xpose.msk.msra.mxu1 %vm69_vm0, %v89_v23 }
  0xd0   :  { %v557_v25 = vpop.eup %556  ;;  %537 = vmatprep.subr.mxu1 %v666_v12  ;;  %v97_v26 = vmul.f32 20.0, %v75_v24 }
  0xd1   :  { %v559_v27 = vpop.eup %558  ;;  %v96_v28 = vmul.f32 %v557_v25, %v67_v2 }
  0xd2   :  { %v82_v29 = vmul.f32 %v559_v27, %v65_v6 }
  0xd3   :  { %523 = vmatpush3.xpose.msk.msra.mxu0 %vm69_vm0, %v96_v28 }
  0xd4   :  { %v98_v30 = vmul.f32 20.0, %v82_v29  ;;  %532 = vmatprep.subr.mxu0 %v666_v12  ;;  %v715_v31 = vmul.f32 %v97_v26, %v82_v29 }
  0xd6   :  { %530 = vmatmul.mubr.msk.f32.vlgmr.msra.gmra.mxu1 %vm69_vm0, %v98_v30  ;;  %525 = vmatmul.mubr.msk.f32.vlgmr.msra.gmra.mxu0 %vm69_vm0, %v97_v26  ;;  %v479_v15 = vsel %vm69_vm0, %v715_v31, 0.0 }
  0xd7   :  { %538 = vmatpush3.xpose.msk.msra.mxu1 %vm69_vm0, %v96_v28  ;;  %533 = vmatpush3.xpose.msk.msra.mxu0 %vm69_vm0, %v89_v23 }
  0xd8   :  { %539 = vmatprep.mubr.msk.f32.mxu1 %vm667_vm1, %v666_v12  ;;  %534 = vmatprep.mubr.msk.f32.mxu0 %vm667_vm1, %v666_v12 }
  0xda   :  { %540 = vmatmul.mubr.msk.f32.vlgmr.msra.gmra.mxu1 %vm69_vm0, %v98_v30  ;;  %535 = vmatmul.mubr.msk.f32.vlgmr.msra.gmra.mxu0 %vm69_vm0, %v97_v26 }
 0x196   :  { %v247_v34 = vpop.f32.mrf.mxu1  ;;  %v171_v35 = vpop.f32.mrf.mxu0 }
 0x198   :  { %v531_v38 = vpop.f32.mrf.mxu1  ;;  %v526_v39 = vpop.f32.mrf.mxu0 }
 0x19a   :  { %v387_v40 = vpop.f32.mrf.mxu1  ;;  %v317_v41 = vpop.f32.mrf.mxu0 }
 0x19b   :  { %v513_v42 = vadd.f32 -1e+09, %v387_v40  ;;  %v512_v43 = vadd.f32 -1e+09, %v317_v41 }
 0x19c   :  { %v541_v44 = vpop.f32.mrf.mxu1  ;;  %v536_v45 = vpop.f32.mrf.mxu0 }
 0x19d   :  { %v405_v46 = vsel %vm401_vm3, %v513_v42, %v387_v40  ;;  %v403_v47 = vsel %vm401_vm3, %v512_v43, %v317_v41 }
 0x19e   :  { %v447_v48 = vmax.f32 %v247_v34, %v405_v46  ;;  %v416_v49 = vmax.f32 %v171_v35, %v403_v47 }
 0x1a0   :  { %v448_v50 = vsel %vm417_vm4, %v447_v48, -inf  ;;  %v418_v51 = vsel %vm417_vm4, %v416_v49, -inf }
 0x1a1   :  { %449 = vmax.xlane.f32.xlu1 %v448_v50  ;;  %419 = vmax.xlane.f32.xlu0 %v418_v51 }
 0x22a   :  { %v450_v55 = vpop.xlane.xlu1 %449  ;;  %v420_v56 = vpop.xlane.xlu0 %419 }
 0x22b   :  { %v451_v57 = vmax.f32 %v446_v53, %v450_v55  ;;  %v421_v58 = vmax.f32 %v415_v54, %v420_v56 }
 0x22d   :  { %v467_v59 = vsub.f32 %v446_v53, %v451_v57  ;;  %474 = vst.msk [vmem:[#allocation4] sm:$0xff] %vm410_vm2, %v451_v57  ;;  %v437_v60 = vsub.f32 %v415_v54, %v421_v58  ;;  %445 = vst.msk [vmem:[#allocation2] sm:$0xff] %vm410_vm2, %v421_v58  ;;  %454 = vperm.xlu1 %551, %v451_v57   ;;  %424 = vperm.xlu0 %550, %v421_v58  }
 0x22f   :  { %v468_v16 = vmul.f32 1.442695, %v467_v59  ;;  %v438_v17 = vmul.f32 1.442695, %v437_v60 }
 0x234   :  { %v487_v33 = vld [vmem:[#allocation4] sm:$0xff]  ;;  %v482_v36 = vld [vmem:[#allocation2] sm:$0xff] }
 0x2a8   :  { %v455_v61 = vpop.permute.xlu1 %454  ;;  %v425_v62 = vpop.permute.xlu0 %424 }
 0x2a9   :  { %v457_v63 = vsub.f32 %v247_v34, %v455_v61  ;;  %v460_v0 = vsub.f32 %v405_v46, %v455_v61  ;;  %v427_v1 = vsub.f32 %v171_v35, %v425_v62  ;;  %v430_v2 = vsub.f32 %v403_v47, %v425_v62 }
 0x2ab   :  { %v458_v3 = vmul.f32 1.442695, %v457_v63  ;;  %v461_v4 = vmul.f32 1.442695, %v460_v0  ;;  %v428_v5 = vmul.f32 1.442695, %v427_v1 }
 0x2ac   :  { %v431_v6 = vmul.f32 1.442695, %v430_v2 }
 0x2ad   :  { %560 = vpow2.f32 %v458_v3 }
 0x2ae   :  { %562 = vpow2.f32 %v461_v4 }
 0x2af   :  { %564 = vpow2.f32 %v428_v5 }
 0x2b0   :  { %566 = vpow2.f32 %v431_v6 }
 0x2b1   :  { %568 = vpow2.f32 %v468_v16 }
 0x2b2   :  { %570 = vpow2.f32 %v438_v17 }
 0x2ba   :  { %v561_v7 = vpop.eup %560 }
 0x2bb   :  { %v563_v8 = vpop.eup %562 }
 0x2bc   :  { %v565_v9 = vpop.eup %564  ;;  %v463_v10 = vadd.f32 %v563_v8, %v561_v7 }
 0x2bd   :  { %v567_v11 = vpop.eup %566 }
 0x2be   :  { %v464_v12 = vsel %vm417_vm4, %v463_v10, 0.0  ;;  %v433_v13 = vadd.f32 %v567_v11, %v565_v9  ;;  %v569_v18 = vpop.eup %568 }
 0x2bf   :  { %465 = vadd.xlane.f32.xlu0 %v464_v12  ;;  %v571_v20 = vpop.eup %570  ;;  %v471_v22 = vmul.f32 %v569_v18, %v470_v19 }
 0x2c0   :  { %v434_v14 = vsel %vm417_vm4, %v433_v13, 0.0  ;;  %v441_v25 = vmul.f32 %v571_v20, %v440_v21 }
 0x2c1   :  { %435 = vadd.xlane.f32.xlu1 %v434_v14 }
 0x2c5   :  { %480 = vadd.xlane.f32.xlu1 %v479_v15 }
 0x348   :  { %v466_v23 = vpop.xlane.xlu0 %465 }
 0x349   :  { %v472_v24 = vadd.f32 %v471_v22, %v466_v23 }
 0x34a   :  { %v436_v26 = vpop.xlane.xlu1 %435 }
 0x34b   :  { %473 = vst.msk [vmem:[#allocation5] sm:$0xff] %vm410_vm2, %v472_v24  ;;  %v442_v27 = vadd.f32 %v441_v25, %v436_v26 }
 0x34d   :  { %444 = vst.msk [vmem:[#allocation3] sm:$0xff] %vm410_vm2, %v442_v27 }
 0x34e   :  { %v481_v41 = vpop.xlane.xlu1 %480 }
 0x352   :  { %v488_v28 = vld [vmem:[#allocation5] sm:$0xff] }
 0x353   :  { %572 = vlog2.f32 %v488_v28 }
 0x354   :  { %v483_v29 = vld [vmem:[#allocation3] sm:$0xff] }
 0x355   :  { %574 = vlog2.f32 %v483_v29 }
 0x360   :  { %v573_v30 = vpop.eup %572 }
 0x361   :  { %v490_v31 = vmul.f32 0.6931472, %v573_v30 }
 0x362   :  { %v575_v32 = vpop.eup %574 }
 0x363   :  { %v485_v34 = vmul.f32 0.6931472, %v575_v32  ;;  %v491_v35 = vadd.f32 %v490_v31, %v487_v33 }
 0x365   :  { %v486_v37 = vadd.f32 %v485_v34, %v482_v36  ;;  %v493_v38 = vmul.f32 0.5, %v491_v35 }
 0x367   :  { %v492_v39 = vmul.f32 0.5, %v486_v37 }
 0x369   :  { %v494_v40 = vadd.f32 %v493_v38, %v492_v39 }
 0x36b   :  { %v495_v42 = vsub.f32 %v494_v40, %v481_v41 }
 0x36d   :  { %496 = vst.msk [vmem:[%s747_s4] sm:$0xff] %vm410_vm2, %v495_v42 }
 0x36e   :  { %501 = vsyncpa [#allocation7], 1 }
 0x36f   :  { %502 = vsyncpa [#allocation9], 1 }
 0x370   :  { %503 = vsyncpa [#allocation12], 1 }

</bundles_post_ra>
